<compile_context>
chip_gen: v6e
topology: v6e:2x2x1
jax: 0.10.0
libtpu: 0.0.40
codegen_flags: <defaults>
</compile_context>

<pallas_src>
import jax
import jax.numpy as jnp
from jax.experimental import pallas as pl
from jax.experimental.pallas import tpu as pltpu

D_IN, D_H1, D_H2, D_OUT = 22, 44, 88, 288

_DEFAULT_BLOCK_ROWS = 4096   # rows per grid step; ~26-30 MiB VMEM incl. dbl-buf
_MIN_PALLAS_ROWS = 256       # below this, plain XLA fusion wins
_VMEM_LIMIT_BYTES = 48 * 1024 * 1024   # < 64 MiB (v7x/TC), << 128 MiB (v5e/v6e)


def _round_up(x, m):
    return (x + m - 1) // m * m


def _is_megacore():
    """Best-effort detection of a two-TensorCore chip (v7x-style)."""
    try:
        kind = jax.devices()[0].device_kind.lower()
        return ("v7" in kind) or ("7x" in kind)
    except Exception:
        return False


def decoder_kernel(h_ref,
                   w1_ref, b1_ref, a1_ref,
                   w2_ref, b2_ref, a2_ref,
                   w3_ref, b3_ref,
                   o_ref):
    h = h_ref[...]

    # Linear(22 -> 44) + PReLU(44)
    z1 = jnp.dot(h, w1_ref[...], preferred_element_type=jnp.float32) + b1_ref[...]
    y1 = jnp.where(z1 > 0, z1, a1_ref[...] * z1)

    # Linear(44 -> 88) + PReLU(88)
    z2 = jnp.dot(y1, w2_ref[...], preferred_element_type=jnp.float32) + b2_ref[...]
    y2 = jnp.where(z2 > 0, z2, a2_ref[...] * z2)

    # Linear(88 -> 288)
    z3 = jnp.dot(y2, w3_ref[...], preferred_element_type=jnp.float32) + b3_ref[...]
    o_ref[...] = z3.astype(o_ref.dtype)


def decoder_pallas(h, params, *, block_rows=_DEFAULT_BLOCK_ROWS,
                   out_dtype=jnp.float32):
    """Run the fused Pallas decoder on a [N, 22] batch."""
    (w1, b1, a1, w2, b2, a2, w3, b3) = params
    N = h.shape[0]
    assert h.shape[1] == D_IN

    # Row alignment: 8 sublanes for f32, 16 for packed bf16 output stores.
    row_align = 16 if jnp.dtype(out_dtype) == jnp.dtype(jnp.bfloat16) else 8

    block_rows = max(row_align, _round_up(block_rows, row_align))
    tb = min(block_rows, _round_up(N, row_align))
    grid_len = pl.cdiv(N, tb)

    # Only split the work for the megacore (two TensorCores share the
    # "parallel" axis); aim for an even step count so both cores get equal
    # work.  On single-core chips one big tile minimizes per-step overhead.
    if _is_megacore() and N >= 2 * row_align:
        if grid_len == 1:
            tb = _round_up(pl.cdiv(N, 2), row_align)
        elif grid_len % 2 != 0:
            tb = _round_up(pl.cdiv(N, grid_len + 1), row_align)
        grid_len = pl.cdiv(N, tb)

    # Constant (weight/bias/alpha) operands: constant index_map => DMA'd once.
    const = lambda shape: pl.BlockSpec(shape, lambda i: (0, 0))

    param_bytes = sum(int(p.size) * p.dtype.itemsize
                      for p in (w1, b1, a1, w2, b2, a2, w3, b3))
    cost = pl.CostEstimate(
        flops=2 * N * (D_IN * D_H1 + D_H1 * D_H2 + D_H2 * D_OUT),
        transcendentals=0,
        bytes_accessed=N * (D_IN * 4 + D_OUT * jnp.dtype(out_dtype).itemsize)
        + param_bytes,
    )

    # Note: the grid over-covers N; Pallas masks the trailing boundary block's
    # writeback, so no host-side pad/slice of the (N, 288) output is needed.
    out = pl.pallas_call(
        decoder_kernel,
        out_shape=jax.ShapeDtypeStruct((N, D_OUT), out_dtype),
        grid_spec=pltpu.PrefetchScalarGridSpec(
            num_scalar_prefetch=0,
            grid=(grid_len,),
            in_specs=[
                pl.BlockSpec((tb, D_IN), lambda i: (i, 0)),   # activation tile
                const((D_IN, D_H1)), const((1, D_H1)), const((1, D_H1)),
                const((D_H1, D_H2)), const((1, D_H2)), const((1, D_H2)),
                const((D_H2, D_OUT)), const((1, D_OUT)),
            ],
            out_specs=pl.BlockSpec((tb, D_OUT), lambda i: (i, 0)),
        ),
        compiler_params=pltpu.CompilerParams(
            dimension_semantics=("parallel",),
            vmem_limit_bytes=_VMEM_LIMIT_BYTES,
        ),
        cost_estimate=cost,
    )(h, w1, b1, a1, w2, b2, a2, w3, b3)

    return out


def decoder_forward(h, params, *, block_rows=_DEFAULT_BLOCK_ROWS,
                    out_dtype=jnp.float32):
    """Dispatcher: plain XLA for tiny batches (launch overhead dominates),
    Pallas kernel for everything else."""
    if h.shape[0] < _MIN_PALLAS_ROWS:
        return decoder_reference(h, params).astype(out_dtype)
    return decoder_pallas(h, params, block_rows=block_rows, out_dtype=out_dtype)


def decoder_reference(h, params):
    (w1, b1, a1, w2, b2, a2, w3, b3) = params
    z1 = h @ w1 + b1
    y1 = jnp.where(z1 > 0, z1, a1 * z1)
    z2 = y1 @ w2 + b2
    y2 = jnp.where(z2 > 0, z2, a2 * z2)
    return y2 @ w3 + b3


def init_params(key):
    """Deterministic init mimicking PyTorch defaults (kaiming-uniform-ish)."""
    ks = jax.random.split(key, 6)

    def linear(kw, kb, fan_in, fan_out):
        bound = 1.0 / jnp.sqrt(fan_in)
        w = jax.random.uniform(kw, (fan_in, fan_out), jnp.float32, -bound, bound)
        b = jax.random.uniform(kb, (1, fan_out), jnp.float32, -bound, bound)
        return w, b

    w1, b1 = linear(ks[0], ks[1], D_IN, D_H1)
    w2, b2 = linear(ks[2], ks[3], D_H1, D_H2)
    w3, b3 = linear(ks[4], ks[5], D_H2, D_OUT)
    a1 = jnp.full((1, D_H1), 0.25, jnp.float32)   # PReLU(44), init a=0.25
    a2 = jnp.full((1, D_H2), 0.25, jnp.float32)   # PReLU(88), init a=0.25
    return (w1, b1, a1, w2, b2, a2, w3, b3)


if __name__ == "__main__":
    key = jax.random.PRNGKey(0)
    k_small, k_big, k_p = jax.random.split(key, 3)
    params = init_params(k_p)

    # 1) Small batch pushed through the Pallas kernel directly.
    h_small = jax.random.normal(k_small, (16, D_IN), jnp.float32)
    y_small = jax.block_until_ready(decoder_pallas(h_small, params))
    ref_small = decoder_reference(h_small, params)
    assert y_small.shape == (16, D_OUT)
    assert jnp.allclose(y_small, ref_small, atol=1e-4, rtol=1e-4), "small mismatch"

    # 2) Non-tile-multiple batch: exercises the masked trailing boundary block
    #    (no host pad / slice anywhere; output is written exactly once).
    h_big = jax.random.normal(k_big, (1000, D_IN), jnp.float32)
    y_big = jax.block_until_ready(decoder_pallas(h_big, params, block_rows=512))
    ref_big = decoder_reference(h_big, params)
    assert y_big.shape == (1000, D_OUT)
    assert jnp.allclose(y_big, ref_big, atol=1e-4, rtol=1e-4), "big mismatch"

    # 3) Default dispatch for tiny batches uses the fused XLA path.
    y_tiny = jax.block_until_ready(decoder_forward(h_small, params))
    assert y_tiny.shape == (16, D_OUT)
    assert jnp.allclose(y_tiny, ref_small, atol=1e-4, rtol=1e-4), "tiny mismatch"

    print("KERNEL_OK")
</pallas_src>

<mosaic_0001>
module attributes {stable_mosaic.version = 11 : i64} {
  func.func @decoder_kernel(%arg0: i32, %arg1: memref<16x22xf32, #tpu.memory_space<vmem>>, %arg2: memref<22x44xf32, #tpu.memory_space<vmem>>, %arg3: memref<1x44xf32, #tpu.memory_space<vmem>>, %arg4: memref<1x44xf32, #tpu.memory_space<vmem>>, %arg5: memref<44x88xf32, #tpu.memory_space<vmem>>, %arg6: memref<1x88xf32, #tpu.memory_space<vmem>>, %arg7: memref<1x88xf32, #tpu.memory_space<vmem>>, %arg8: memref<88x288xf32, #tpu.memory_space<vmem>>, %arg9: memref<1x288xf32, #tpu.memory_space<vmem>>, %arg10: memref<16x288xf32, #tpu.memory_space<vmem>>) attributes {dimension_semantics = [#tpu.dimension_semantics<parallel>], iteration_bounds = array<i64: 1>, scalar_prefetch = 0 : i64, scratch_operands = 0 : i64, tpu.core_type = #tpu.core_type<tc>, window_params = [{transform_indices = @transform_0, window_bounds = array<i64: 16, 22>}, {pipeline_mode = #tpu.pipeline_mode<synchronous>, transform_indices = @transform_1, window_bounds = array<i64: 22, 44>}, {pipeline_mode = #tpu.pipeline_mode<synchronous>, transform_indices = @transform_2, window_bounds = array<i64: 1, 44>}, {pipeline_mode = #tpu.pipeline_mode<synchronous>, transform_indices = @transform_3, window_bounds = array<i64: 1, 44>}, {pipeline_mode = #tpu.pipeline_mode<synchronous>, transform_indices = @transform_4, window_bounds = array<i64: 44, 88>}, {pipeline_mode = #tpu.pipeline_mode<synchronous>, transform_indices = @transform_5, window_bounds = array<i64: 1, 88>}, {pipeline_mode = #tpu.pipeline_mode<synchronous>, transform_indices = @transform_6, window_bounds = array<i64: 1, 88>}, {pipeline_mode = #tpu.pipeline_mode<synchronous>, transform_indices = @transform_7, window_bounds = array<i64: 88, 288>}, {pipeline_mode = #tpu.pipeline_mode<synchronous>, transform_indices = @transform_8, window_bounds = array<i64: 1, 288>}, {transform_indices = @transform_9, window_bounds = array<i64: 16, 288>}]} {
    %c0 = arith.constant 0 : index
    %c0_0 = arith.constant 0 : index
    %0 = vector.load %arg1[%c0, %c0_0] : memref<16x22xf32, #tpu.memory_space<vmem>>, vector<16x22xf32>
    %c0_1 = arith.constant 0 : index
    %c0_2 = arith.constant 0 : index
    %1 = vector.load %arg2[%c0_1, %c0_2] : memref<22x44xf32, #tpu.memory_space<vmem>>, vector<22x44xf32>
    %cst = arith.constant dense<0.000000e+00> : vector<16x44xf32>
    %2 = tpu.matmul %0, %1, %cst {dimension_numbers = #tpu.dot_dimension_numbers<[1], [0], [0], [1], [0, 0, 1, 1], [], []>} : vector<16x22xf32>, vector<22x44xf32>, vector<16x44xf32> -> vector<16x44xf32>
    %c0_3 = arith.constant 0 : index
    %c0_4 = arith.constant 0 : index
    %3 = vector.load %arg3[%c0_3, %c0_4] : memref<1x44xf32, #tpu.memory_space<vmem>>, vector<1x44xf32>
    %4 = vector.broadcast %3 : vector<1x44xf32> to vector<16x44xf32>
    %5 = arith.addf %2, %4 : vector<16x44xf32>
    %cst_5 = arith.constant 0.000000e+00 : f32
    %6 = vector.broadcast %cst_5 : f32 to vector<16x44xf32>
    %7 = arith.cmpf ogt, %5, %6 : vector<16x44xf32>
    %c0_6 = arith.constant 0 : index
    %c0_7 = arith.constant 0 : index
    %8 = vector.load %arg4[%c0_6, %c0_7] : memref<1x44xf32, #tpu.memory_space<vmem>>, vector<1x44xf32>
    %9 = vector.broadcast %8 : vector<1x44xf32> to vector<16x44xf32>
    %10 = arith.mulf %9, %5 : vector<16x44xf32>
    %11 = arith.select %7, %5, %10 : vector<16x44xi1>, vector<16x44xf32>
    %c0_8 = arith.constant 0 : index
    %c0_9 = arith.constant 0 : index
    %12 = vector.load %arg5[%c0_8, %c0_9] : memref<44x88xf32, #tpu.memory_space<vmem>>, vector<44x88xf32>
    %cst_10 = arith.constant dense<0.000000e+00> : vector<16x88xf32>
    %13 = tpu.matmul %11, %12, %cst_10 {dimension_numbers = #tpu.dot_dimension_numbers<[1], [0], [0], [1], [0, 0, 1, 1], [], []>} : vector<16x44xf32>, vector<44x88xf32>, vector<16x88xf32> -> vector<16x88xf32>
    %c0_11 = arith.constant 0 : index
    %c0_12 = arith.constant 0 : index
    %14 = vector.load %arg6[%c0_11, %c0_12] : memref<1x88xf32, #tpu.memory_space<vmem>>, vector<1x88xf32>
    %15 = vector.broadcast %14 : vector<1x88xf32> to vector<16x88xf32>
    %16 = arith.addf %13, %15 : vector<16x88xf32>
    %cst_13 = arith.constant 0.000000e+00 : f32
    %17 = vector.broadcast %cst_13 : f32 to vector<16x88xf32>
    %18 = arith.cmpf ogt, %16, %17 : vector<16x88xf32>
    %c0_14 = arith.constant 0 : index
    %c0_15 = arith.constant 0 : index
    %19 = vector.load %arg7[%c0_14, %c0_15] : memref<1x88xf32, #tpu.memory_space<vmem>>, vector<1x88xf32>
    %20 = vector.broadcast %19 : vector<1x88xf32> to vector<16x88xf32>
    %21 = arith.mulf %20, %16 : vector<16x88xf32>
    %22 = arith.select %18, %16, %21 : vector<16x88xi1>, vector<16x88xf32>
    %c0_16 = arith.constant 0 : index
    %c0_17 = arith.constant 0 : index
    %23 = vector.load %arg8[%c0_16, %c0_17] : memref<88x288xf32, #tpu.memory_space<vmem>>, vector<88x288xf32>
    %cst_18 = arith.constant dense<0.000000e+00> : vector<16x288xf32>
    %24 = tpu.matmul %22, %23, %cst_18 {dimension_numbers = #tpu.dot_dimension_numbers<[1], [0], [0], [1], [0, 0, 1, 1], [], []>} : vector<16x88xf32>, vector<88x288xf32>, vector<16x288xf32> -> vector<16x288xf32>
    %c0_19 = arith.constant 0 : index
    %c0_20 = arith.constant 0 : index
    %25 = vector.load %arg9[%c0_19, %c0_20] : memref<1x288xf32, #tpu.memory_space<vmem>>, vector<1x288xf32>
    %26 = vector.broadcast %25 : vector<1x288xf32> to vector<16x288xf32>
    %27 = arith.addf %24, %26 : vector<16x288xf32>
    %c0_21 = arith.constant 0 : index
    %c0_22 = arith.constant 0 : index
    %28 = vector.load %arg10[%c0_21, %c0_22] : memref<16x288xf32, #tpu.memory_space<vmem>>, vector<16x288xf32>
    tpu.vector_store %arg10[%c0_21, %c0_22], %27 {strides = array<i32>} : memref<16x288xf32, #tpu.memory_space<vmem>>, vector<16x288xf32>,
    return
  }
  func.func @transform_0(%arg0: i32) -> (i32, i32) {
    %c0_i32 = arith.constant 0 : i32
    %c0_i32_0 = arith.constant 0 : i32
    return %arg0, %c0_i32 : i32, i32
  }
  func.func @transform_1(%arg0: i32) -> (i32, i32) {
    %c0_i32 = arith.constant 0 : i32
    %c0_i32_0 = arith.constant 0 : i32
    %c0_i32_1 = arith.constant 0 : i32
    return %c0_i32, %c0_i32_0 : i32, i32
  }
  func.func @transform_2(%arg0: i32) -> (i32, i32) {
    %c0_i32 = arith.constant 0 : i32
    %c0_i32_0 = arith.constant 0 : i32
    %c0_i32_1 = arith.constant 0 : i32
    return %c0_i32, %c0_i32_0 : i32, i32
  }
  func.func @transform_3(%arg0: i32) -> (i32, i32) {
    %c0_i32 = arith.constant 0 : i32
    %c0_i32_0 = arith.constant 0 : i32
    %c0_i32_1 = arith.constant 0 : i32
    return %c0_i32, %c0_i32_0 : i32, i32
  }
  func.func @transform_4(%arg0: i32) -> (i32, i32) {
    %c0_i32 = arith.constant 0 : i32
    %c0_i32_0 = arith.constant 0 : i32
    %c0_i32_1 = arith.constant 0 : i32
    return %c0_i32, %c0_i32_0 : i32, i32
  }
  func.func @transform_5(%arg0: i32) -> (i32, i32) {
    %c0_i32 = arith.constant 0 : i32
    %c0_i32_0 = arith.constant 0 : i32
    %c0_i32_1 = arith.constant 0 : i32
    return %c0_i32, %c0_i32_0 : i32, i32
  }
  func.func @transform_6(%arg0: i32) -> (i32, i32) {
    %c0_i32 = arith.constant 0 : i32
    %c0_i32_0 = arith.constant 0 : i32
    %c0_i32_1 = arith.constant 0 : i32
    return %c0_i32, %c0_i32_0 : i32, i32
  }
  func.func @transform_7(%arg0: i32) -> (i32, i32) {
    %c0_i32 = arith.constant 0 : i32
    %c0_i32_0 = arith.constant 0 : i32
    %c0_i32_1 = arith.constant 0 : i32
    return %c0_i32, %c0_i32_0 : i32, i32
  }
  func.func @transform_8(%arg0: i32) -> (i32, i32) {
    %c0_i32 = arith.constant 0 : i32
    %c0_i32_0 = arith.constant 0 : i32
    %c0_i32_1 = arith.constant 0 : i32
    return %c0_i32, %c0_i32_0 : i32, i32
  }
  func.func @transform_9(%arg0: i32) -> (i32, i32) {
    %c0_i32 = arith.constant 0 : i32
    %c0_i32_0 = arith.constant 0 : i32
    return %arg0, %c0_i32 : i32, i32
  }
}

</mosaic_0001>

<bundles_post_ra>
// kernel: tpu_custom_call.1
= control target key start
LH: loop header
LB: loop body
LE: loop exit
PB: predicated region body
PF: predicated region fallthrough
CT: control target
= control target key end

     0   :  { %14 = vsyncpa [#allocation3], 0  ;;  %s851_s0 = inlined_call_operand.hbm [shape: f32[16,22], index: 0, kind: input, shape index: {}]   ;;  %s852_s1 = inlined_call_operand.hbm [shape: f32[22,44], index: 1, kind: input, shape index: {}]   ;;  %s853_s2 = inlined_call_operand.vmem [shape: f32[1,44], index: 2, kind: input, shape index: {}]   ;;  %s854_s3 = inlined_call_operand.vmem [shape: f32[1,44], index: 3, kind: input, shape index: {}]   ;;  %s855_s4 = inlined_call_operand.hbm [shape: f32[44,88], index: 4, kind: input, shape index: {}]   ;;  %s856_s5 = inlined_call_operand.vmem [shape: f32[1,88], index: 5, kind: input, shape index: {}]   ;;  %s857_s6 = inlined_call_operand.vmem [shape: f32[1,88], index: 6, kind: input, shape index: {}]   ;;  %s858_s7 = inlined_call_operand.hbm [shape: f32[88,288], index: 7, kind: input, shape index: {}]   ;;  %s859_s8 = inlined_call_operand.vmem [shape: f32[1,288], index: 8, kind: input, shape index: {}]   ;;  %s860_s9 = inlined_call_operand.hbm [shape: f32[16,288], index: 9, kind: output, shape index: {}]  }
   0x1   :  { %15 = vsyncpa [#allocation6], 0 }
   0x2   :  { %16 = vsyncpa [#allocation9], 0 }
   0x3   :  { %17 = vsyncpa [#allocation4], 0  ;;  %s753_s30 = smov [#allocation5]   ;;  %s754_s11 = smov [#allocation2]  }
   0x4   :  { %s35_s10 = sshll.u32 %s753_s30, 4  ;;  %s23_s12 = sshll.u32 %s754_s11, 4  ;;  %s36_s10 = int_to_ptr.vmem [resolvable:$true] %s35_s10  ;;  %s24_s12 = int_to_ptr.vmem [resolvable:$true] %s23_s12 }
   0x5   :  { %s653_s13 = scalar_lea.vmem %s36_s10, 384  ;;  %p658_p1 = scmp.lt.s32.totalorder %s36_s10, %s36_s10 }
   0x6   :  { %p654_p0 = scmp.ne.s32.totalorder %s36_s10, %s653_s13  ;;  %p659_p2 = scmp.lt.s32.totalorder %s653_s13, %s653_s13 }
   0x8   :  { %p660_p3 = por %p659_p2, %p658_p1 }
   0xa   :  { %p661_p4 = pnand %p660_p3, %p654_p0 }
   0xc   :  { %664 = shalt.err (!%p661_p4)
}
   0xd   :  { %s755_s14 = smov 128   ;;  %s756_s15 = smov 8  }
   0xe   :  { %41 = dma.hbm_to_vmem [thread:$0]  %s852_s1, 384, %s36_s10, [#allocation6], %s755_s14, %s755_s14, %s756_s15  }
   0xf   :  { %s673_s18 = scalar_lea.vmem %s24_s12, 256  ;;  %p678_p6 = scmp.lt.s32.totalorder %s24_s12, %s24_s12 }
  0x10   :  { %p674_p5 = scmp.ne.s32.totalorder %s24_s12, %s673_s18  ;;  %p679_p7 = scmp.lt.s32.totalorder %s673_s18, %s673_s18 }
  0x12   :  { %p680_p8 = por %p679_p7, %p678_p6 }
  0x14   :  { %p681_p9 = pnand %p680_p8, %p674_p5 }
  0x16   :  { %684 = shalt.err (!%p681_p9)
}
  0x17   :  { %29 = dma.hbm_to_vmem [thread:$0]  %s851_s0, 256, %s24_s12, [#allocation3], %s755_s14, %s755_s14, %s756_s15  }
  0x18   :  { %s757_s21 = smov [#allocation7]   ;;  %s758_s23 = smov [#allocation8]  }
  0x19   :  { %s51_s22 = sshll.u32 %s757_s21, 4  ;;  %s67_s24 = sshll.u32 %s758_s23, 4  ;;  %s52_s22 = int_to_ptr.vmem [resolvable:$true] %s51_s22  ;;  %s68_s24 = int_to_ptr.vmem [resolvable:$true] %s67_s24 }
  0x1a   :  { %s693_s25 = scalar_lea.vmem %s52_s22, 768  ;;  %p698_p11 = scmp.lt.s32.totalorder %s52_s22, %s52_s22 }
  0x1b   :  { %p694_p10 = scmp.ne.s32.totalorder %s52_s22, %s693_s25  ;;  %p699_p12 = scmp.lt.s32.totalorder %s693_s25, %s693_s25 }
  0x1d   :  { %p700_p13 = por %p699_p12, %p698_p11 }
  0x1f   :  { %p701_p0 = pnand %p700_p13, %p694_p10 }
  0x21   :  { %704 = shalt.err (!%p701_p0)
}
  0x22   :  { %57 = dma.hbm_to_vmem [thread:$0]  %s855_s4, 768, %s52_s22, [#allocation6], %s755_s14, %s755_s14, %s756_s15  }
  0x23   :  { %s713_s27 = scalar_lea.vmem %s68_s24, 4224  ;;  %p718_p2 = scmp.lt.s32.totalorder %s68_s24, %s68_s24 }
  0x24   :  { %p714_p1 = scmp.ne.s32.totalorder %s68_s24, %s713_s27  ;;  %p719_p3 = scmp.lt.s32.totalorder %s713_s27, %s713_s27 }
  0x26   :  { %p720_p4 = por %p719_p3, %p718_p2 }
  0x28   :  { %p721_p5 = pnand %p720_p4, %p714_p1 }
  0x2a   :  { %724 = shalt.err (!%p721_p5)
}
  0x2b   :  { %s759_s0 = smov 384   ;;  %s760_s28 = smov 24  }
  0x2c   :  { %73 = dma.hbm_to_vmem [thread:$0]  %s858_s7, 4224, %s68_s24, [#allocation9], %s759_s0, %s759_s0, %s760_s28  }
  0x2d   :  { %745 = dma.done.wait [#allocation3], 256  }
  0x2e   :  { %746 = vsyncadd [#allocation3], 4294967040 }
  0x2f   :  { %747 = dma.done.wait [#allocation6], 1152  }
  0x30   :  { %748 = vsyncadd [#allocation6], 4294966144 }
  0x31   :  { %749 = dma.done.wait [#allocation9], 4224  }
  0x32   :  { %750 = vsyncadd [#allocation9], 4294963072  ;;  %vm107_vm0 = vcmask 1045504   ;;  %vm100_vm1 = vcmask 179200   ;;  %v92_v0 = vld [vmem:[#allocation5 + $0x10] sm:$0x3f] }
  0x33   :  { %v91_v1 = vld [vmem:[#allocation5 + $0x8] sm:$0xff]  ;;  %vm219_vm2 = vcmask 1043456   ;;  %586 = vmatprep.subr.msk.mxu0 %vm107_vm0, %v92_v0  ;;  %v88_v2 = vld [vmem:[#allocation2] sm:$0xff]  ;;  %v204_v3 = vld [vmem:[#allocation7 + $0x28] sm:$0xf]  ;;  %vm212_vm5 = vcmask 359424  }
  0x34   :  { %587 = vmatpush3.msk.msra.mxu0 %vm107_vm0, %v92_v0  ;;  %v90_v4 = vld [vmem:[#allocation5] sm:$0xff]  ;;  %592 = vmatprep.mubr.msk.f32.mxu0 %vm100_vm1, %v88_v2  ;;  %v203_v5 = vld [vmem:[#allocation7 + $0x20] sm:$0xff]  ;;  %v202_v7 = vld [vmem:[#allocation7 + $0x18] sm:$0xff]  ;;  %v761_v54 = vmov 0.0   ;;  %vm361_vm8 = vcmask 719872   ;;  %vm522_vm9 = vcmask 261120  }
  0x35   :  { %588 = vmatprep.subr.mxu0 %v91_v1  ;;  %595 = vmatprep.subr.msk.mxu1 %vm219_vm2, %v204_v3  ;;  %v89_v6 = vld [vmem:[#allocation2 + $0x8] sm:$0xff]  ;;  %v201_v8 = vld [vmem:[#allocation7 + $0x10] sm:$0xff]  ;;  %v200_v9 = vld [vmem:[#allocation7 + $0x8] sm:$0xff] }
  0x36   :  { %589 = vmatpush3.msra.mxu0 %v91_v1  ;;  %596 = vmatpush3.msk.msra.mxu1 %vm219_vm2, %v204_v3  ;;  %v199_v10 = vld [vmem:[#allocation7] sm:$0xff]  ;;  %v342_v11 = vld [vmem:[#allocation8 + $0xf8] sm:$0xff]  ;;  %v343_v13 = vld [vmem:[#allocation8 + $0x100] sm:$0xff]  ;;  %v346_v1 = vlaneseq }
  0x37   :  { %590 = vmatprep.subr.mxu0 %v90_v4  ;;  %597 = vmatprep.subr.mxu1 %v203_v5  ;;  %v341_v12 = vld [vmem:[#allocation8 + $0xf0] sm:$0xff]  ;;  %v339_v14 = vld [vmem:[#allocation8 + $0xe0] sm:$0xff]  ;;  %v338_v15 = vld [vmem:[#allocation8 + $0xd8] sm:$0xff] }
  0x38   :  { %591 = vmatpush3.msra.mxu0 %v90_v4  ;;  %598 = vmatpush3.msra.mxu1 %v203_v5  ;;  %v336_v16 = vld [vmem:[#allocation8 + $0xc8] sm:$0xff]  ;;  %v335_v17 = vld [vmem:[#allocation8 + $0xc0] sm:$0xff]  ;;  %v333_v18 = vld [vmem:[#allocation8 + $0xb0] sm:$0xff]  ;;  %v347_v2 = vshrl.u32 %v346_v1, 7 }
  0x39   :  { %593 = vmatmul.mubr.msk.f32.vlgmr.msra.gmra.mxu0 %vm100_vm1, %v89_v6  ;;  %599 = vmatprep.subr.mxu1 %v202_v7  ;;  %v332_v19 = vld [vmem:[#allocation8 + $0xa8] sm:$0xff]  ;;  %v330_v20 = vld [vmem:[#allocation8 + $0x98] sm:$0xff]  ;;  %v329_v21 = vld [vmem:[#allocation8 + $0x90] sm:$0xff] }
  0x3a   :  { %600 = vmatpush3.msra.mxu1 %v202_v7  ;;  %378 = vmatprep.subr.mxu0 %v342_v11  ;;  %v327_v22 = vld [vmem:[#allocation8 + $0x80] sm:$0xff]  ;;  %v326_v23 = vld [vmem:[#allocation8 + $0x78] sm:$0xff]  ;;  %v324_v24 = vld [vmem:[#allocation8 + $0x68] sm:$0xff]  ;;  %v348_v3 = vsub.s32 0, %v347_v2  ;;  %v356_v5 = vsub.s32 2, %v347_v2  ;;  %v352_v6 = vsub.s32 1, %v347_v2 }
  0x3b   :  { %601 = vmatprep.subr.mxu1 %v201_v8  ;;  %379 = vmatpush1.msra.mxu0 %v341_v12  ;;  %v323_v25 = vld [vmem:[#allocation8 + $0x60] sm:$0xff]  ;;  %v546_v26 = vld [vmem:[%s853_s2] ss:$0 sm:$0xff]  ;;  %v337_v37 = vld [vmem:[#allocation8 + $0xd0] sm:$0xff] }
  0x3c   :  { %602 = vmatpush3.msra.mxu1 %v201_v8  ;;  %380 = vmatprep.subr.mxu0 %v339_v14  ;;  %v550_v29 = vld [vmem:[%s854_s3] ss:$0 sm:$0xff]  ;;  %v334_v38 = vld [vmem:[#allocation8 + $0xb8] sm:$0xff]  ;;  %v331_v39 = vld [vmem:[#allocation8 + $0xa0] sm:$0xff] }
  0x3d   :  { %603 = vmatprep.subr.mxu1 %v200_v9  ;;  %381 = vmatpush1.msra.mxu0 %v338_v15  ;;  %v340_v36 = vld [vmem:[#allocation8 + $0xe8] sm:$0xff]  ;;  %v325_v41 = vld [vmem:[#allocation8 + $0x70] sm:$0xff]  ;;  %v322_v44 = vld [vmem:[#allocation8 + $0x58] sm:$0xff] }
  0x3e   :  { %604 = vmatpush3.msra.mxu1 %v200_v9  ;;  %382 = vmatprep.subr.mxu0 %v336_v16  ;;  %v328_v40 = vld [vmem:[#allocation8 + $0x88] sm:$0xff]  ;;  %v321_v42 = vld [vmem:[#allocation8 + $0x50] sm:$0xff]  ;;  %v318_v45 = vld [vmem:[#allocation8 + $0x38] sm:$0xff] }
  0x3f   :  { %605 = vmatprep.subr.mxu1 %v199_v10  ;;  %383 = vmatpush1.msra.mxu0 %v335_v17  ;;  %v320_v43 = vld [vmem:[#allocation8 + $0x48] sm:$0xff]  ;;  %v317_v46 = vld [vmem:[#allocation8 + $0x30] sm:$0xff]  ;;  %v319_v47 = vld [vmem:[#allocation8 + $0x40] sm:$0xff] }
  0x40   :  { %606 = vmatpush3.msra.mxu1 %v199_v10  ;;  %384 = vmatprep.subr.mxu0 %v333_v18  ;;  %v315_v48 = vld [vmem:[#allocation8 + $0x20] sm:$0xff]  ;;  %v314_v49 = vld [vmem:[#allocation8 + $0x18] sm:$0xff]  ;;  %v316_v50 = vld [vmem:[#allocation8 + $0x28] sm:$0xff] }
  0x41   :  { %610 = vmatprep.subr.mxu1 %v343_v13  ;;  %385 = vmatpush1.msra.mxu0 %v332_v19  ;;  %v312_v51 = vld [vmem:[#allocation8 + $0x8] sm:$0xff]  ;;  %v311_v52 = vld [vmem:[#allocation8] sm:$0xff]  ;;  %v313_v53 = vld [vmem:[#allocation8 + $0x10] sm:$0xff] }
  0x42   :  { %386 = vmatprep.subr.mxu0 %v330_v20  ;;  %432 = vmatprep.mubr.f32.mxu0 %v761_v54  ;;  %v551_v55 = vld [vmem:[%s856_s5] ss:$0 sm:$0xff] }
  0x43   :  { %387 = vmatpush1.msra.mxu0 %v329_v21  ;;  %v555_v58 = vld [vmem:[%s857_s6] ss:$0 sm:$0xff]  ;;  %s762_s6 = smov [#allocation10]  }
  0x44   :  { %388 = vmatprep.subr.mxu0 %v327_v22  ;;  %v344_v4 = vld [vmem:[%s859_s8] sm:$0x7]  ;;  %s532_s15 = sshll.u32 %s762_s6, 4  ;;  %s533_s15 = int_to_ptr.vmem [resolvable:$true] %s532_s15 }
  0x45   :  { %389 = vmatpush1.msra.mxu0 %v326_v23  ;;  %v349_v7 = vrot.slane %v344_v4, %v348_v3  ;;  %v357_v8 = vrot.slane %v344_v4, %v356_v5  ;;  %v353_v9 = vrot.slane %v344_v4, %v352_v6  ;;  %s725_s8 = scalar_lea.vmem %s533_s15, 768  ;;  %p730_p7 = scmp.lt.s32.totalorder %s533_s15, %s533_s15 }
  0x46   :  { %390 = vmatprep.subr.mxu0 %v324_v24  ;;  %p726_p6 = scmp.ne.s32.totalorder %s533_s15, %s725_s8  ;;  %p731_p8 = scmp.lt.s32.totalorder %s725_s8, %s725_s8 }
  0x47   :  { %391 = vmatpush1.msra.mxu0 %v323_v25 }
  0x48   :  { %392 = vmatprep.subr.mxu0 %v321_v42  ;;  %p732_p9 = por %p731_p8, %p730_p7 }
  0x49   :  { %393 = vmatpush1.msra.mxu0 %v320_v43 }
  0x4a   :  { %394 = vmatprep.subr.mxu0 %v318_v45  ;;  %p733_p10 = pnand %p732_p9, %p726_p6 }
  0x4b   :  { %395 = vmatpush1.msra.mxu0 %v317_v46 }
  0x4c   :  { %396 = vmatprep.subr.mxu0 %v315_v48 }
  0x4d   :  { %397 = vmatpush1.msra.mxu0 %v314_v49 }
  0x4e   :  { %398 = vmatprep.subr.mxu0 %v312_v51 }
  0x4f   :  { %399 = vmatpush1.msra.mxu0 %v311_v52 }
  0xf9   :  { %v594_v27 = vpop.f32.mrf.mxu0 }
  0xfa   :  { %v183_v28 = vadd.f32 %v594_v27, %v546_v26 }
  0xfb   :  { %v177_v30 = vpop.f32.mrf.mxu0 }
  0xfc   :  { %v178_v31 = vadd.f32 %v546_v26, %v177_v30  ;;  %v196_v32 = vmul.f32 %v550_v29, %v183_v28  ;;  %vm187_vm3 = vcmp.gt.f32.partialorder %v183_v28, 0.0 }
  0xfe   :  { %vm186_vm4 = vcmp.gt.f32.partialorder %v178_v31, 0.0  ;;  %v195_v33 = vmul.f32 %v550_v29, %v178_v31  ;;  %v198_v35 = vsel %vm187_vm3, %v183_v28, %v196_v32 }
 0x100   :  { %v197_v34 = vsel %vm186_vm4, %v178_v31, %v195_v33 }
 0x101   :  { %607 = vmatprep.mubr.msk.f32.mxu1 %vm212_vm5, %v197_v34 }
 0x102   :  { %608 = vmatmul.mubr.msk.f32.vlgmr.msra.gmra.mxu1 %vm212_vm5, %v198_v35 }
 0x103   :  { %611 = vmatpush3.msra.mxu1 %v343_v13 }
 0x104   :  { %612 = vmatprep.subr.mxu1 %v340_v36 }
 0x105   :  { %613 = vmatpush3.msra.mxu1 %v340_v36 }
 0x106   :  { %614 = vmatprep.subr.mxu1 %v337_v37 }
 0x107   :  { %615 = vmatpush3.msra.mxu1 %v337_v37 }
 0x108   :  { %616 = vmatprep.subr.mxu1 %v334_v38 }
 0x109   :  { %617 = vmatpush3.msra.mxu1 %v334_v38 }
 0x10a   :  { %618 = vmatprep.subr.mxu1 %v331_v39 }
 0x10b   :  { %619 = vmatpush3.msra.mxu1 %v331_v39 }
 0x10c   :  { %620 = vmatprep.subr.mxu1 %v328_v40 }
 0x10d   :  { %621 = vmatpush3.msra.mxu1 %v328_v40 }
 0x10e   :  { %622 = vmatprep.subr.mxu1 %v325_v41 }
 0x10f   :  { %623 = vmatpush3.msra.mxu1 %v325_v41 }
 0x110   :  { %624 = vmatprep.subr.mxu1 %v322_v44 }
 0x111   :  { %625 = vmatpush3.msra.mxu1 %v322_v44 }
 0x112   :  { %626 = vmatprep.subr.mxu1 %v319_v47 }
 0x113   :  { %627 = vmatpush3.msra.mxu1 %v319_v47 }
 0x114   :  { %628 = vmatprep.subr.mxu1 %v316_v50 }
 0x115   :  { %629 = vmatpush3.msra.mxu1 %v316_v50 }
 0x116   :  { %630 = vmatprep.subr.mxu1 %v313_v53 }
 0x117   :  { %631 = vmatpush3.msra.mxu1 %v313_v53 }
 0x1c2   :  { %v609_v56 = vpop.f32.mrf.mxu1 }
 0x1c3   :  { %v295_v57 = vadd.f32 %v609_v56, %v551_v55 }
 0x1c4   :  { %v289_v59 = vpop.f32.mrf.mxu1 }
 0x1c5   :  { %v290_v60 = vadd.f32 %v551_v55, %v289_v59  ;;  %v308_v61 = vmul.f32 %v555_v58, %v295_v57  ;;  %vm299_vm6 = vcmp.gt.f32.partialorder %v295_v57, 0.0 }
 0x1c7   :  { %vm298_vm7 = vcmp.gt.f32.partialorder %v290_v60, 0.0  ;;  %v307_v62 = vmul.f32 %v555_v58, %v290_v60  ;;  %v310_v0 = vsel %vm299_vm6, %v295_v57, %v308_v61 }
 0x1c9   :  { %v309_v63 = vsel %vm298_vm7, %v290_v60, %v307_v62 }
 0x1ca   :  { %556 = vmatmul.mubr.msk.f32.vlgmr.msra.gmra.mxu0 %vm361_vm8, %v309_v63  ;;  %632 = vmatprep.mubr.msk.f32.mxu1 %vm361_vm8, %v309_v63 }
 0x1cb   :  { %633 = vmatmul.mubr.msk.f32.vlgmr.msra.gmra.mxu1 %vm361_vm8, %v310_v0  ;;  %438 = vmatprep.mubr.f32.mxu0 %v761_v54 }
 0x1ce   :  { %557 = vmatmul.mubr.msk.f32.gmra.mxu0 %vm361_vm8, %v310_v0 }
 0x28a   :  { %v434_v10 = vpop.f32.mrf.mxu0 }
 0x28b   :  { %v435_v11 = vadd.f32 %v434_v10, %v349_v7  ;;  %v634_v12 = vpop.f32.mrf.mxu1 }
 0x28c   :  { %v517_v13 = vadd.f32 %v634_v12, %v357_v8  ;;  %v436_v14 = vpop.f32.mrf.mxu0 }
 0x28d   :  { %520 = vst [vmem:[#allocation10] sm:$0xff] %v435_v11  ;;  %v437_v15 = vadd.f32 %v436_v14, %v353_v9  ;;  %v511_v16 = vpop.f32.mrf.mxu1 }
 0x28e   :  { %526 = vst.msk [vmem:[#allocation10 + $0x28] sm:$0xff] %vm522_vm9, %v517_v13  ;;  %v512_v17 = vadd.f32 %v511_v16, %v357_v8  ;;  %v440_v18 = vpop.f32.mrf.mxu0 }
 0x28f   :  { %521 = vst [vmem:[#allocation10 + $0x8] sm:$0xff] %v437_v15  ;;  %v441_v19 = vadd.f32 %v440_v18, %v349_v7 }
 0x290   :  { %523 = vst.msk [vmem:[#allocation10 + $0x10] sm:$0xff] %vm522_vm9, %v512_v17  ;;  %v442_v20 = vpop.f32.mrf.mxu0 }
 0x291   :  { %524 = vst [vmem:[#allocation10 + $0x18] sm:$0xff] %v441_v19  ;;  %v443_v21 = vadd.f32 %v442_v20, %v353_v9 }
 0x293   :  { %525 = vst [vmem:[#allocation10 + $0x20] sm:$0xff] %v443_v21 }
 0x294   :  { %736 = shalt.err (!%p733_p10)
}
 0x295   :  { %538 = dma.vmem_to_hbm [thread:$0]  %s533_s15, 768, %s860_s9, [#allocation4], %s759_s0, %s759_s0, %s760_s28  }
 0x296   :  { %751 = dma.done.wait [#allocation4], 768  }
 0x297   :  { %752 = vsyncadd [#allocation4], 4294966528 }
 0x298   :  { %542 = vsyncpa [#allocation3], 1 }
 0x299   :  { %543 = vsyncpa [#allocation6], 1 }
 0x29a   :  { %544 = vsyncpa [#allocation9], 1 }
 0x29b   :  { %545 = vsyncpa [#allocation4], 1 }

</bundles_post_ra>
